<compile_context>
chip_gen: v6e
topology: v6e:2x2x1
jax: 0.10.0
libtpu: 0.0.40
codegen_flags: <defaults>
</compile_context>

<pallas_src>
import functools

import jax
import jax.numpy as jnp
from jax.experimental import pallas as pl
from jax.experimental.pallas import tpu as pltpu

_LANES = 128


def _round_up(x, m):
    return ((x + m - 1) // m) * m


def baseline_mse_kernel(x_ref, t_ref,
                        w1_ref, b1_ref,
                        w2_ref, b2_ref,
                        w3_ref, b3_ref,
                        out_ref,
                        *, true_batch, block_cols):
    """One batch tile (feature-major) of Linear->ReLU->Linear->ReLU->head + SSE.

    x_ref : [D, TB]   states tile, batch on lanes
    t_ref : [1, TB]   target rewards tile
    w1/b1 : [H, D] / [H, 1]
    w2/b2 : [H, H] / [H, 1]
    w3/b3 : [H, 1] / [1, 1]   (final Linear(H, 1) stored as a column)
    out_ref : [1, 128]  this block's partial sum of squared errors,
                        broadcast across the 128 lanes (lane-dense store).
    """
    i = pl.program_id(0)
    last = pl.num_programs(0) - 1

    xT = x_ref[...]                                                   # [D, TB]
    h = jnp.dot(w1_ref[...], xT, preferred_element_type=jnp.float32) + b1_ref[...]
    h = jnp.maximum(h, 0.0)
    h = jnp.dot(w2_ref[...], h, preferred_element_type=jnp.float32) + b2_ref[...]
    h = jnp.maximum(h, 0.0)                                           # [H, TB]

    # Head Linear(H, 1): VPU multiply + sublane (XLU) reduce, lane-dense result.
    pred = jnp.sum(h * w3_ref[...], axis=0, keepdims=True) + b3_ref[...]  # [1, TB]
    diff = pred - t_ref[...]
    sq = diff * diff

    # Full tiles skip the padding mask entirely.
    @pl.when(i != last)
    def _():
        out_ref[...] = jnp.full((1, _LANES), jnp.sum(sq), jnp.float32)

    # Only the last block can contain out-of-range (garbage) columns.
    @pl.when(i == last)
    def _():
        col = i * block_cols + jax.lax.broadcasted_iota(jnp.int32, sq.shape, 1)
        masked = jnp.where(col < true_batch, sq, 0.0)
        out_ref[...] = jnp.full((1, _LANES), jnp.sum(masked), jnp.float32)


def baseline_estimator_loss(states, target_rewards, params, *, block_cols=2048):
    """states: [B, D_in] f32, target_rewards: [B] f32, params: dict (transposed layout)."""
    assert block_cols % _LANES == 0
    B, D = states.shape
    H = params["w1t"].shape[0]

    # Batch tile: as large as requested, but no larger than the (lane-rounded) batch.
    tb = max(_LANES, min(block_cols, _round_up(B, _LANES)))
    nb = -(-B // tb)                         # ceil-div (static python int)

    # Feature-major layout: batch on the lane axis. No zero-padding of the
    # ragged tail -- the kernel masks the last block's out-of-range columns.
    xT = states.T                            # [D, B]
    tT = target_rewards.reshape(1, B)        # [1, B]

    kernel = functools.partial(baseline_mse_kernel,
                               true_batch=B, block_cols=tb)

    bp = nb * tb
    flops = bp * (2 * D * H + 2 * H * H + 4 * H + 4)
    bytes_accessed = 4 * (D * B + B + H * D + H * H + 3 * H + 1 + nb * _LANES)

    grid_spec = pltpu.PrefetchScalarGridSpec(
        num_scalar_prefetch=0,
        grid=(nb,),
        in_specs=[
            pl.BlockSpec((D, tb), lambda i: (0, i)),   # states tile  [D, TB]
            pl.BlockSpec((1, tb), lambda i: (0, i)),   # targets tile [1, TB]
            pl.BlockSpec((H, D), lambda i: (0, 0)),    # w1T (VMEM-resident)
            pl.BlockSpec((H, 1), lambda i: (0, 0)),    # b1
            pl.BlockSpec((H, H), lambda i: (0, 0)),    # w2T
            pl.BlockSpec((H, 1), lambda i: (0, 0)),    # b2
            pl.BlockSpec((H, 1), lambda i: (0, 0)),    # w3 column
            pl.BlockSpec((1, 1), lambda i: (0, 0)),    # b3
        ],
        # Per-block partial SSE: each grid step owns a disjoint (1,128) slab,
        # so the batch axis is safely "parallel" (v7x 2-TC sharding).
        out_specs=pl.BlockSpec((1, _LANES), lambda i: (0, i)),
    )

    partials = pl.pallas_call(
        kernel,
        out_shape=jax.ShapeDtypeStruct((1, nb * _LANES), jnp.float32),
        grid_spec=grid_spec,
        compiler_params=pltpu.CompilerParams(
            dimension_semantics=("parallel",)),
        cost_estimate=pl.CostEstimate(flops=flops, transcendentals=0,
                                      bytes_accessed=bytes_accessed),
    )(xT, tT,
      params["w1t"], params["b1"],
      params["w2t"], params["b2"],
      params["w3"], params["b3"])

    # Each block wrote its partial SSE replicated across 128 lanes; pick lane 0.
    per_block = partials.reshape(nb, _LANES)[:, 0]
    return jnp.sum(per_block) / B


def init_params(key, input_dim, hidden_dim):
    """Init matching BaselineEstimator(num_layers=2):
    Linear(D,H) -> ReLU -> Linear(H,H) -> ReLU -> Linear(H,1).
    Weights are stored transposed (feature-major): w1t [H,D], w2t [H,H], w3 [H,1]."""
    k1, k2, k3, k4, k5, k6 = jax.random.split(key, 6)
    s1 = 1.0 / jnp.sqrt(input_dim)
    s2 = 1.0 / jnp.sqrt(hidden_dim)
    return {
        "w1t": jax.random.uniform(k1, (hidden_dim, input_dim), jnp.float32, -s1, s1),
        "b1":  jax.random.uniform(k2, (hidden_dim, 1), jnp.float32, -s1, s1),
        "w2t": jax.random.uniform(k3, (hidden_dim, hidden_dim), jnp.float32, -s2, s2),
        "b2":  jax.random.uniform(k4, (hidden_dim, 1), jnp.float32, -s2, s2),
        "w3":  jax.random.uniform(k5, (hidden_dim, 1), jnp.float32, -s2, s2),
        "b3":  jax.random.uniform(k6, (1, 1), jnp.float32, -s2, s2),
    }


def reference_loss(states, target_rewards, params):
    h = jnp.maximum(states @ params["w1t"].T + params["b1"][:, 0], 0.0)
    h = jnp.maximum(h @ params["w2t"].T + params["b2"][:, 0], 0.0)
    y = h @ params["w3"][:, 0] + params["b3"][0, 0]
    return jnp.mean((y - target_rewards) ** 2)


if __name__ == "__main__":
    # MuJoCo-style shapes: obs dim 16, hidden 32; batch 200 (not a multiple of
    # 128) exercises the ragged-block column mask.
    B, D_IN, HIDDEN = 200, 16, 32

    key = jax.random.PRNGKey(0)
    k_params, k_states, k_targets = jax.random.split(key, 3)

    params = init_params(k_params, D_IN, HIDDEN)
    states = jax.random.normal(k_states, (B, D_IN), jnp.float32)
    target_rewards = jax.random.normal(k_targets, (B,), jnp.float32)

    loss_fn = jax.jit(baseline_estimator_loss, static_argnames=("block_cols",))

    # Single-block path (default large tile clamps to the small batch).
    loss = loss_fn(states, target_rewards, params)
    jax.block_until_ready(loss)

    # Multi-block path: 128-column tiles -> grid=(2,), ragged last block,
    # per-block partial sums reduced in the wrapper.
    loss_multi = loss_fn(states, target_rewards, params, block_cols=128)
    jax.block_until_ready(loss_multi)

    ref = reference_loss(states, target_rewards, params)
    assert jnp.allclose(loss, ref, rtol=1e-5, atol=1e-5), (loss, ref)
    assert jnp.allclose(loss_multi, ref, rtol=1e-5, atol=1e-5), (loss_multi, ref)

    print("KERNEL_OK")
</pallas_src>

<mosaic_0001>
module attributes {stable_mosaic.version = 11 : i64} {
  func.func @baseline_mse_kernel(%arg0: i32, %arg1: memref<16x256xf32, #tpu.memory_space<vmem>>, %arg2: memref<1x256xf32, #tpu.memory_space<vmem>>, %arg3: memref<32x16xf32, #tpu.memory_space<vmem>>, %arg4: memref<32x1xf32, #tpu.memory_space<vmem>>, %arg5: memref<32x32xf32, #tpu.memory_space<vmem>>, %arg6: memref<32x1xf32, #tpu.memory_space<vmem>>, %arg7: memref<32x1xf32, #tpu.memory_space<vmem>>, %arg8: memref<1x1xf32, #tpu.memory_space<vmem>>, %arg9: memref<1x128xf32, #tpu.memory_space<vmem>>) attributes {dimension_semantics = [#tpu.dimension_semantics<parallel>], iteration_bounds = array<i64: 1>, scalar_prefetch = 0 : i64, scratch_operands = 0 : i64, tpu.core_type = #tpu.core_type<tc>, window_params = [{transform_indices = @transform_0, window_bounds = array<i64: 16, 256>}, {transform_indices = @transform_1, window_bounds = array<i64: 1, 256>}, {pipeline_mode = #tpu.pipeline_mode<synchronous>, transform_indices = @transform_2, window_bounds = array<i64: 32, 16>}, {pipeline_mode = #tpu.pipeline_mode<synchronous>, transform_indices = @transform_3, window_bounds = array<i64: 32, 1>}, {pipeline_mode = #tpu.pipeline_mode<synchronous>, transform_indices = @transform_4, window_bounds = array<i64: 32, 32>}, {pipeline_mode = #tpu.pipeline_mode<synchronous>, transform_indices = @transform_5, window_bounds = array<i64: 32, 1>}, {pipeline_mode = #tpu.pipeline_mode<synchronous>, transform_indices = @transform_6, window_bounds = array<i64: 32, 1>}, {pipeline_mode = #tpu.pipeline_mode<synchronous>, transform_indices = @transform_7, window_bounds = array<i64: 1, 1>}, {transform_indices = @transform_8, window_bounds = array<i64: 1, 128>}]} {
    %c0 = arith.constant 0 : index
    %c0_0 = arith.constant 0 : index
    %0 = vector.load %arg1[%c0, %c0_0] : memref<16x256xf32, #tpu.memory_space<vmem>>, vector<16x256xf32>
    %c0_1 = arith.constant 0 : index
    %c0_2 = arith.constant 0 : index
    %1 = vector.load %arg3[%c0_1, %c0_2] : memref<32x16xf32, #tpu.memory_space<vmem>>, vector<32x16xf32>
    %cst = arith.constant dense<0.000000e+00> : vector<32x256xf32>
    %2 = tpu.matmul %1, %0, %cst {dimension_numbers = #tpu.dot_dimension_numbers<[1], [0], [0], [1], [0, 0, 1, 1], [], []>} : vector<32x16xf32>, vector<16x256xf32>, vector<32x256xf32> -> vector<32x256xf32>
    %c0_3 = arith.constant 0 : index
    %c0_4 = arith.constant 0 : index
    %3 = vector.load %arg4[%c0_3, %c0_4] : memref<32x1xf32, #tpu.memory_space<vmem>>, vector<32x1xf32>
    %4 = vector.broadcast %3 : vector<32x1xf32> to vector<32x256xf32>
    %5 = arith.addf %2, %4 : vector<32x256xf32>
    %cst_5 = arith.constant 0.000000e+00 : f32
    %6 = vector.broadcast %cst_5 : f32 to vector<32x256xf32>
    %7 = arith.maximumf %5, %6 : vector<32x256xf32>
    %c0_6 = arith.constant 0 : index
    %c0_7 = arith.constant 0 : index
    %8 = vector.load %arg5[%c0_6, %c0_7] : memref<32x32xf32, #tpu.memory_space<vmem>>, vector<32x32xf32>
    %cst_8 = arith.constant dense<0.000000e+00> : vector<32x256xf32>
    %9 = tpu.matmul %8, %7, %cst_8 {dimension_numbers = #tpu.dot_dimension_numbers<[1], [0], [0], [1], [0, 0, 1, 1], [], []>} : vector<32x32xf32>, vector<32x256xf32>, vector<32x256xf32> -> vector<32x256xf32>
    %c0_9 = arith.constant 0 : index
    %c0_10 = arith.constant 0 : index
    %10 = vector.load %arg6[%c0_9, %c0_10] : memref<32x1xf32, #tpu.memory_space<vmem>>, vector<32x1xf32>
    %11 = vector.broadcast %10 : vector<32x1xf32> to vector<32x256xf32>
    %12 = arith.addf %9, %11 : vector<32x256xf32>
    %cst_11 = arith.constant 0.000000e+00 : f32
    %13 = vector.broadcast %cst_11 : f32 to vector<32x256xf32>
    %14 = arith.maximumf %12, %13 : vector<32x256xf32>
    %c0_12 = arith.constant 0 : index
    %c0_13 = arith.constant 0 : index
    %15 = vector.load %arg7[%c0_12, %c0_13] : memref<32x1xf32, #tpu.memory_space<vmem>>, vector<32x1xf32>
    %16 = vector.broadcast %15 : vector<32x1xf32> to vector<32x256xf32>
    %17 = arith.mulf %14, %16 : vector<32x256xf32>
    %cst_14 = arith.constant dense<0.000000e+00> : vector<256xf32>
    %18 = vector.multi_reduction <add>, %17, %cst_14 [0] : vector<32x256xf32> to vector<256xf32>
    %19 = vector.shape_cast %18 : vector<256xf32> to vector<1x256xf32>
    %c0_15 = arith.constant 0 : index
    %c0_16 = arith.constant 0 : index
    %20 = vector.load %arg8[%c0_15, %c0_16] : memref<1x1xf32, #tpu.memory_space<vmem>>, vector<1x1xf32>
    %21 = vector.broadcast %20 : vector<1x1xf32> to vector<1x256xf32>
    %22 = arith.addf %19, %21 : vector<1x256xf32>
    %c0_17 = arith.constant 0 : index
    %c0_18 = arith.constant 0 : index
    %23 = vector.load %arg2[%c0_17, %c0_18] : memref<1x256xf32, #tpu.memory_space<vmem>>, vector<1x256xf32>
    %24 = arith.subf %22, %23 : vector<1x256xf32>
    %25 = arith.mulf %24, %24 : vector<1x256xf32>
    %c0_i32 = arith.constant 0 : i32
    %26 = arith.cmpi ne, %arg0, %c0_i32 : i32
    %27 = arith.extui %26 : i1 to i32
    %c0_i32_19 = arith.constant 0 : i32
    %28 = arith.cmpi ne, %27, %c0_i32_19 : i32
    scf.if %28 {
      %32 = vector.shape_cast %25 : vector<1x256xf32> to vector<1x1x256xf32>
      %cst_22 = arith.constant dense<0.000000e+00> : vector<1xf32>
      %33 = vector.multi_reduction <add>, %32, %cst_22 [1, 2] : vector<1x1x256xf32> to vector<1xf32>
      %34 = vector.shape_cast %33 : vector<1xf32> to vector<1x1x1xf32>
      %35 = vector.extract %34[0, 0, 0] : f32 from vector<1x1x1xf32>
      %36 = vector.broadcast %35 : f32 to vector<1x128xf32>
      %c0_23 = arith.constant 0 : index
      %c0_24 = arith.constant 0 : index
      %37 = vector.load %arg9[%c0_23, %c0_24] : memref<1x128xf32, #tpu.memory_space<vmem>>, vector<1x128xf32>
      tpu.vector_store %arg9[%c0_23, %c0_24], %36 {strides = array<i32>} : memref<1x128xf32, #tpu.memory_space<vmem>>, vector<1x128xf32>,
    } else {
    }
    %c0_i32_20 = arith.constant 0 : i32
    %29 = arith.cmpi eq, %arg0, %c0_i32_20 : i32
    %30 = arith.extui %29 : i1 to i32
    %c0_i32_21 = arith.constant 0 : i32
    %31 = arith.cmpi ne, %30, %c0_i32_21 : i32
    scf.if %31 {
      %c256_i32 = arith.constant 256 : i32
      %32 = arith.muli %arg0, %c256_i32 : i32
      %33 = tpu.iota {dimensions = array<i32: 1>} : vector<1x256xi32>
      %34 = vector.broadcast %32 : i32 to vector<1x256xi32>
      %35 = arith.addi %34, %33 : vector<1x256xi32>
      %c200_i32 = arith.constant 200 : i32
      %36 = vector.broadcast %c200_i32 : i32 to vector<1x256xi32>
      %37 = arith.cmpi slt, %35, %36 : vector<1x256xi32>
      %cst_22 = arith.constant 0.000000e+00 : f32
      %38 = vector.broadcast %cst_22 : f32 to vector<1x256xf32>
      %39 = arith.select %37, %25, %38 : vector<1x256xi1>, vector<1x256xf32>
      %40 = vector.shape_cast %39 : vector<1x256xf32> to vector<1x1x256xf32>
      %cst_23 = arith.constant dense<0.000000e+00> : vector<1xf32>
      %41 = vector.multi_reduction <add>, %40, %cst_23 [1, 2] : vector<1x1x256xf32> to vector<1xf32>
      %42 = vector.shape_cast %41 : vector<1xf32> to vector<1x1x1xf32>
      %43 = vector.extract %42[0, 0, 0] : f32 from vector<1x1x1xf32>
      %44 = vector.broadcast %43 : f32 to vector<1x128xf32>
      %c0_24 = arith.constant 0 : index
      %c0_25 = arith.constant 0 : index
      %45 = vector.load %arg9[%c0_24, %c0_25] : memref<1x128xf32, #tpu.memory_space<vmem>>, vector<1x128xf32>
      tpu.vector_store %arg9[%c0_24, %c0_25], %44 {strides = array<i32>} : memref<1x128xf32, #tpu.memory_space<vmem>>, vector<1x128xf32>,
    } else {
    }
    return
  }
  func.func @transform_0(%arg0: i32) -> (i32, i32) {
    %c0_i32 = arith.constant 0 : i32
    %c0_i32_0 = arith.constant 0 : i32
    return %c0_i32, %arg0 : i32, i32
  }
  func.func @transform_1(%arg0: i32) -> (i32, i32) {
    %c0_i32 = arith.constant 0 : i32
    %c0_i32_0 = arith.constant 0 : i32
    return %c0_i32, %arg0 : i32, i32
  }
  func.func @transform_2(%arg0: i32) -> (i32, i32) {
    %c0_i32 = arith.constant 0 : i32
    %c0_i32_0 = arith.constant 0 : i32
    %c0_i32_1 = arith.constant 0 : i32
    return %c0_i32, %c0_i32_0 : i32, i32
  }
  func.func @transform_3(%arg0: i32) -> (i32, i32) {
    %c0_i32 = arith.constant 0 : i32
    %c0_i32_0 = arith.constant 0 : i32
    %c0_i32_1 = arith.constant 0 : i32
    return %c0_i32, %c0_i32_0 : i32, i32
  }
  func.func @transform_4(%arg0: i32) -> (i32, i32) {
    %c0_i32 = arith.constant 0 : i32
    %c0_i32_0 = arith.constant 0 : i32
    %c0_i32_1 = arith.constant 0 : i32
    return %c0_i32, %c0_i32_0 : i32, i32
  }
  func.func @transform_5(%arg0: i32) -> (i32, i32) {
    %c0_i32 = arith.constant 0 : i32
    %c0_i32_0 = arith.constant 0 : i32
    %c0_i32_1 = arith.constant 0 : i32
    return %c0_i32, %c0_i32_0 : i32, i32
  }
  func.func @transform_6(%arg0: i32) -> (i32, i32) {
    %c0_i32 = arith.constant 0 : i32
    %c0_i32_0 = arith.constant 0 : i32
    %c0_i32_1 = arith.constant 0 : i32
    return %c0_i32, %c0_i32_0 : i32, i32
  }
  func.func @transform_7(%arg0: i32) -> (i32, i32) {
    %c0_i32 = arith.constant 0 : i32
    %c0_i32_0 = arith.constant 0 : i32
    %c0_i32_1 = arith.constant 0 : i32
    return %c0_i32, %c0_i32_0 : i32, i32
  }
  func.func @transform_8(%arg0: i32) -> (i32, i32) {
    %c0_i32 = arith.constant 0 : i32
    %c0_i32_0 = arith.constant 0 : i32
    return %c0_i32, %arg0 : i32, i32
  }
}

</mosaic_0001>

<bundles_post_ra>
// kernel: baseline_estimator_loss.1
= control target key start
LH: loop header
LB: loop body
LE: loop exit
PB: predicated region body
PF: predicated region fallthrough
CT: control target
= control target key end

     0   :  { %v456_v3 = vmov 0.0   ;;  %v457_v4 = vmov 0   ;;  %vm63_vm0 = vcmask 130048   ;;  %vm201_vm1 = vcmask 261120   ;;  %s596_s0 = inlined_call_operand.vmem [shape: f32[16,200], index: 0, kind: input, shape index: {}]   ;;  %s597_s2 = inlined_call_operand.vmem [shape: f32[32,16], index: 2, kind: input, shape index: {}]   ;;  %s598_s3 = inlined_call_operand.vmem [shape: f32[32,1], index: 3, kind: input, shape index: {}]   ;;  %s599_s7 = inlined_call_operand.<no memory space> [shape: f32[1,1], index: 7, kind: input, shape index: {}]   ;;  %s600_s5 = inlined_call_operand.vmem [shape: f32[32,1], index: 5, kind: input, shape index: {}]   ;;  %s601_s6 = inlined_call_operand.vmem [shape: f32[32,1], index: 6, kind: input, shape index: {}]   ;;  %s602_s4 = inlined_call_operand.vmem [shape: f32[32,32], index: 4, kind: input, shape index: {}]   ;;  %s603_s1 = inlined_call_operand.vmem [shape: f32[1,200], index: 1, kind: input, shape index: {}]   ;;  %s604_s8 = inlined_call_operand.vmem [shape: f32[1,128], index: 8, kind: output, shape index: {}]  }
   0x1   :  { %v34_v0 = vld [vmem:[%s596_s0 + $0x18] sm:$0xff]  ;;  %v33_v1 = vld [vmem:[%s596_s0 + $0x10] sm:$0xff]  ;;  %v32_v2 = vld [vmem:[%s596_s0 + $0x8] sm:$0xff]  ;;  %140 = vmatprep.mubr.f32.mxu0 %v456_v3  ;;  %454 = vset.pattern.permute.xlu0 %v457_v4  ;;  %v13_v5 = vstv %s599_s7  ;;  %vm423_vm3 = vcmask 1040384  }
   0x2   :  { %104 = vmatprep.subr.mxu0 %v34_v0  ;;  %v31_v6 = vld [vmem:[%s596_s0] sm:$0xff]  ;;  %455 = vset.pattern.permute.xlu1 %v457_v4  ;;  %14 = vst [vmem:[#allocation2] sm:$0x1] %v13_v5  ;;  %v42_v8 = vld [vmem:[%s598_s3 + $0x18] sm:$0xff]  ;;  %v40_v9 = vld [vmem:[%s598_s3 + $0x8] sm:$0xff] }
   0x3   :  { %105 = vmatpush1.msra.mxu0 %v33_v1  ;;  %v35_v7 = vld [vmem:[%s597_s2] sm:$0xff]  ;;  %278 = vmatprep.mubr.f32.mxu1 %v456_v3  ;;  %v41_v10 = vld [vmem:[%s598_s3 + $0x10] sm:$0xff]  ;;  %v36_v12 = vld [vmem:[%s597_s2 + $0x8] sm:$0xff] }
   0x4   :  { %106 = vmatprep.subr.mxu0 %v32_v2  ;;  %60 = vperm.xlu0 %454, %v42_v8   ;;  %v39_v11 = vld [vmem:[%s598_s3] sm:$0xff]  ;;  %v178_v14 = vld [vmem:[%s600_s5 + $0x8] sm:$0xff]  ;;  %v37_v15 = vld [vmem:[%s597_s2 + $0x10] sm:$0xff] }
   0x5   :  { %107 = vmatpush1.msra.mxu0 %v31_v6  ;;  %50 = vperm.xlu1 %455, %v40_v9   ;;  %v177_v13 = vld [vmem:[%s600_s5] sm:$0xff]  ;;  %v179_v16 = vld [vmem:[%s600_s5 + $0x10] sm:$0xff]  ;;  %v180_v17 = vld [vmem:[%s600_s5 + $0x18] sm:$0xff] }
   0x6   :  { %442 = vmatmul.mubr.msk.f32.vlgmr.msra.gmra.mxu0 %vm63_vm0, %v35_v7  ;;  %v38_v18 = vld [vmem:[%s597_s2 + $0x18] sm:$0xff]  ;;  %v311_v19 = vld [vmem:[%s601_s6] sm:$0xff]  ;;  %v312_v20 = vld [vmem:[%s601_s6 + $0x8] sm:$0xff] }
   0x7   :  { %146 = vmatprep.mubr.f32.mxu0 %v456_v3  ;;  %v313_v21 = vld [vmem:[%s601_s6 + $0x10] sm:$0xff]  ;;  %v314_v22 = vld [vmem:[%s601_s6 + $0x18] sm:$0xff]  ;;  %v173_v52 = vld [vmem:[%s602_s4] sm:$0xff] }
   0x8   :  { %55 = vperm.xlu0 %454, %v41_v10   ;;  %v174_v53 = vld [vmem:[%s602_s4 + $0x8] sm:$0xff]  ;;  %v175_v54 = vld [vmem:[%s602_s4 + $0x10] sm:$0xff]  ;;  %v176_v55 = vld [vmem:[%s602_s4 + $0x18] sm:$0xff] }
   0x9   :  { %45 = vperm.xlu1 %455, %v39_v11   ;;  %v361_v23 = vld [vmem:[#allocation2] sm:$0x1] }
   0xa   :  { %443 = vmatmul.mubr.msk.f32.gmra.mxu0 %vm63_vm0, %v36_v12 }
   0xb   :  { %152 = vmatprep.mubr.f32.mxu0 %v456_v3 }
   0xc   :  { %183 = vperm.xlu0 %454, %v177_v13  }
   0xd   :  { %188 = vperm.xlu1 %455, %v178_v14  }
   0xe   :  { %444 = vmatmul.mubr.msk.f32.gmra.mxu0 %vm63_vm0, %v37_v15 }
   0xf   :  { %158 = vmatprep.mubr.f32.mxu0 %v456_v3 }
  0x10   :  { %193 = vperm.xlu0 %454, %v179_v16  }
  0x11   :  { %198 = vperm.xlu1 %455, %v180_v17  }
  0x12   :  { %445 = vmatmul.mubr.msk.f32.gmra.mxu0 %vm63_vm0, %v38_v18 }
  0x14   :  { %317 = vperm.xlu0 %454, %v311_v19  }
  0x15   :  { %322 = vperm.xlu1 %455, %v312_v20  }
  0x18   :  { %327 = vperm.xlu0 %454, %v313_v21  }
  0x19   :  { %332 = vperm.xlu1 %455, %v314_v22  }
  0x1c   :  { %364 = vperm.xlu0 %454, %v361_v23  }
  0x7f   :  { %v61_v28 = vpop.permute.xlu0 %60 }
  0x80   :  { %v51_v31 = vpop.permute.xlu1 %50 }
  0x83   :  { %v56_v33 = vpop.permute.xlu0 %55 }
  0x84   :  { %v46_v39 = vpop.permute.xlu1 %45 }
  0x87   :  { %v184_v56 = vpop.permute.xlu0 %183 }
  0x88   :  { %v189_v57 = vpop.permute.xlu1 %188 }
  0x8b   :  { %v194_v58 = vpop.permute.xlu0 %193 }
  0x8c   :  { %v199_v61 = vpop.permute.xlu1 %198 }
  0x8f   :  { %v318_v1 = vpop.permute.xlu0 %317 }
  0x90   :  { %v323_v10 = vpop.permute.xlu1 %322 }
  0x93   :  { %v328_v16 = vpop.permute.xlu0 %327 }
  0xc6   :  { %v142_v24 = vpop.f32.mrf.mxu0 }
  0xc7   :  { %v143_v46 = vadd.f32 %v142_v24, %v46_v39 }
  0xc8   :  { %v144_v25 = vpop.f32.mrf.mxu0 }
  0xc9   :  { %v145_v44 = vadd.f32 %v144_v25, %v46_v39  ;;  %v165_v51 = vmax.f32 %v143_v46, 0.0 }
  0xca   :  { %v148_v26 = vpop.f32.mrf.mxu0 }
  0xcb   :  { %v149_v42 = vadd.f32 %v148_v26, %v51_v31  ;;  %v166_v50 = vmax.f32 %v145_v44, 0.0 }
  0xcc   :  { %v150_v27 = vpop.f32.mrf.mxu0 }
  0xcd   :  { %v151_v40 = vadd.f32 %v150_v27, %v51_v31  ;;  %v167_v49 = vmax.f32 %v149_v42, 0.0 }
  0xce   :  { %v154_v29 = vpop.f32.mrf.mxu0 }
  0xcf   :  { %v155_v38 = vadd.f32 %v154_v29, %v56_v33  ;;  %v168_v48 = vmax.f32 %v151_v40, 0.0  ;;  %v333_v29 = vpop.permute.xlu1 %332 }
  0xd0   :  { %v156_v30 = vpop.f32.mrf.mxu0 }
  0xd1   :  { %v157_v36 = vadd.f32 %v156_v30, %v56_v33  ;;  %v169_v47 = vmax.f32 %v155_v38, 0.0 }
  0xd2   :  { %v160_v32 = vpop.f32.mrf.mxu0 }
  0xd3   :  { %v161_v34 = vadd.f32 %v160_v32, %v61_v28  ;;  %v170_v45 = vmax.f32 %v157_v36, 0.0 }
  0xd4   :  { %v162_v35 = vpop.f32.mrf.mxu0 }
  0xd5   :  { %v163_v37 = vadd.f32 %v162_v35, %v61_v28  ;;  %v171_v43 = vmax.f32 %v161_v34, 0.0  ;;  %v367_v34 = vlaneseq }
  0xd7   :  { %v172_v41 = vmax.f32 %v163_v37, 0.0  ;;  %v368_v40 = vshrl.u32 %v367_v34, 7 }
  0xd9   :  { %238 = vmatprep.subr.mxu1 %v172_v41 }
  0xda   :  { %239 = vmatpush1.msra.mxu1 %v171_v43 }
  0xdb   :  { %240 = vmatprep.subr.mxu1 %v170_v45  ;;  %v369_v45 = vsub.s32 0, %v368_v40 }
  0xdc   :  { %241 = vmatpush1.msra.mxu1 %v169_v47 }
  0xdd   :  { %242 = vmatprep.subr.mxu1 %v168_v48  ;;  %v365_v48 = vpop.permute.xlu0 %364 }
  0xde   :  { %243 = vmatpush1.msra.mxu1 %v167_v49  ;;  %v373_v49 = vld [vmem:[%s603_s1] sm:$0x3] }
  0xdf   :  { %244 = vmatprep.subr.mxu1 %v166_v50  ;;  %v381_v50 = vsub.s32 1, %v368_v40 }
  0xe0   :  { %245 = vmatpush1.msra.mxu1 %v165_v51 }
  0xe1   :  { %446 = vmatmul.mubr.msk.f32.vlgmr.msra.gmra.mxu1 %vm201_vm1, %v173_v52 }
  0xe2   :  { %284 = vmatprep.mubr.f32.mxu1 %v456_v3 }
  0xe5   :  { %447 = vmatmul.mubr.msk.f32.gmra.mxu1 %vm201_vm1, %v174_v53  ;;  %v414_v53 = vand.u32 127, %v367_v34 }
  0xe6   :  { %290 = vmatprep.mubr.f32.mxu1 %v456_v3 }
  0xe9   :  { %448 = vmatmul.mubr.msk.f32.gmra.mxu1 %vm201_vm1, %v175_v54  ;;  %v370_v54 = vrot.slane %v365_v48, %v369_v45 }
  0xea   :  { %296 = vmatprep.mubr.f32.mxu1 %v456_v3 }
  0xed   :  { %449 = vmatmul.mubr.msk.f32.gmra.mxu1 %vm201_vm1, %v176_v55  ;;  %v378_v55 = vrot.slane %v373_v49, %v369_v45 }
 0x1a1   :  { %v280_v59 = vpop.f32.mrf.mxu1 }
 0x1a2   :  { %v281_v62 = vadd.f32 %v280_v59, %v184_v56 }
 0x1a3   :  { %v282_v60 = vpop.f32.mrf.mxu1 }
 0x1a4   :  { %v283_v2 = vadd.f32 %v282_v60, %v184_v56  ;;  %v303_v3 = vmax.f32 %v281_v62, 0.0 }
 0x1a5   :  { %v286_v63 = vpop.f32.mrf.mxu1 }
 0x1a6   :  { %v287_v0 = vadd.f32 %v286_v63, %v189_v57  ;;  %v304_v11 = vmax.f32 %v283_v2, 0.0  ;;  %v335_v17 = vmul.f32 %v318_v1, %v303_v3 }
 0x1a7   :  { %v288_v4 = vpop.f32.mrf.mxu1 }
 0x1a8   :  { %v305_v5 = vmax.f32 %v287_v0, 0.0  ;;  %v289_v6 = vadd.f32 %v288_v4, %v189_v57  ;;  %v336_v23 = vmul.f32 %v318_v1, %v304_v11 }
 0x1a9   :  { %v292_v7 = vpop.f32.mrf.mxu1 }
 0x1aa   :  { %v306_v8 = vmax.f32 %v289_v6, 0.0  ;;  %v293_v9 = vadd.f32 %v292_v7, %v194_v58  ;;  %v337_v13 = vmul.f32 %v323_v10, %v305_v5 }
 0x1ab   :  { %v294_v12 = vpop.f32.mrf.mxu1 }
 0x1ac   :  { %v307_v14 = vmax.f32 %v293_v9, 0.0  ;;  %v295_v15 = vadd.f32 %v294_v12, %v194_v58  ;;  %v338_v19 = vmul.f32 %v323_v10, %v306_v8  ;;  %v343_v25 = vadd.f32 %v337_v13, %v335_v17 }
 0x1ad   :  { %v298_v18 = vpop.f32.mrf.mxu1  ;;  %v382_v58 = vrot.slane %v373_v49, %v381_v50 }
 0x1ae   :  { %v339_v20 = vmul.f32 %v328_v16, %v307_v14  ;;  %v308_v21 = vmax.f32 %v295_v15, 0.0  ;;  %v299_v22 = vadd.f32 %v298_v18, %v199_v61  ;;  %v352_v30 = vadd.f32 %v338_v19, %v336_v23 }
 0x1af   :  { %v300_v24 = vpop.f32.mrf.mxu1 }
 0x1b0   :  { %v340_v26 = vmul.f32 %v328_v16, %v308_v21  ;;  %v309_v27 = vmax.f32 %v299_v22, 0.0  ;;  %v301_v28 = vadd.f32 %v300_v24, %v199_v61  ;;  %v344_v31 = vadd.f32 %v343_v25, %v339_v20 }
 0x1b1   :  { %v415_v61 = vadd.s32 128, %v414_v53 }
 0x1b2   :  { %v341_v32 = vmul.f32 %v333_v29, %v309_v27  ;;  %v310_v33 = vmax.f32 %v301_v28, 0.0  ;;  %v353_v35 = vadd.f32 %v352_v30, %v340_v26 }
 0x1b3   :  { %vm420_vm2 = vcmp.lt.s32.totalorder %v415_v61, 200 }
 0x1b4   :  { %v345_v36 = vadd.f32 %v344_v31, %v341_v32  ;;  %v342_v37 = vmul.f32 %v333_v29, %v310_v33 }
 0x1b6   :  { %v346_v38 = vrot.slane %v345_v36, 4  ;;  %v354_v39 = vadd.f32 %v353_v35, %v342_v37 }
 0x1b8   :  { %v347_v41 = vadd.f32 %v346_v38, %v345_v36  ;;  %v355_v42 = vrot.slane %v354_v39, 4 }
 0x1ba   :  { %v348_v43 = vrot.slane %v347_v41, 2  ;;  %v356_v44 = vadd.f32 %v355_v42, %v354_v39 }
 0x1bc   :  { %v349_v46 = vadd.f32 %v348_v43, %v347_v41  ;;  %v357_v47 = vrot.slane %v356_v44, 2 }
 0x1be   :  { %v358_v51 = vadd.f32 %v357_v47, %v356_v44  ;;  %v350_v52 = vrot.slane %v349_v46, 1 }
 0x1c0   :  { %v359_v56 = vrot.slane %v358_v51, 1  ;;  %v351_v57 = vadd.f32 %v350_v52, %v349_v46 }
 0x1c2   :  { %v360_v59 = vadd.f32 %v359_v56, %v358_v51  ;;  %v371_v60 = vadd.f32 %v370_v54, %v351_v57 }
 0x1c4   :  { %v372_v62 = vadd.f32 %v370_v54, %v360_v59  ;;  %v385_v63 = vsub.f32 %v371_v60, %v378_v55 }
 0x1c6   :  { %v386_v0 = vsub.f32 %v372_v62, %v382_v58  ;;  %v387_v1 = vmul.f32 %v385_v63, %v385_v63 }
 0x1c8   :  { %v388_v2 = vmul.f32 %v386_v0, %v386_v0  ;;  %v424_v5 = vsel %vm423_vm3, %v387_v1, 0.0 }
 0x1ca   :  { %v422_v4 = vsel %vm420_vm2, %v388_v2, 0.0 }
 0x1cb   :  { %v425_v6 = vsel %vm423_vm3, %v422_v4, 0.0 }
 0x1cc   :  { %v426_v3 = vadd.f32 %v425_v6, %v424_v5 }
 0x1ce   :  { %427 = vadd.xlane.f32.xlu1 %v426_v3 }
 0x257   :  { %v428_v7 = vpop.xlane.xlu1 %427 }
 0x258   :  { %v429_v8 = vrot.slane %v428_v7, 4 }
 0x25a   :  { %v430_v9 = vadd.f32 %v429_v8, %v428_v7 }
 0x25c   :  { %v431_v10 = vrot.slane %v430_v9, 2 }
 0x25e   :  { %v432_v11 = vadd.f32 %v431_v10, %v430_v9 }
 0x260   :  { %v433_v12 = vrot.slane %v432_v11, 1 }
 0x262   :  { %v434_v13 = vadd.f32 %v433_v12, %v432_v11 }
 0x264   :  { %450 = vpush %v434_v13 }
 0x295   :  { %s451_s1 = spop %450 }
 0x296   :  { %v436_v14 = vstv %s451_s1 }
 0x297   :  { %437 = vst [vmem:[%s604_s8] sm:$0x1] %v436_v14 }

</bundles_post_ra>
